<compile_context>
chip_gen: v7x
topology: tpu7x:2x2x1
jax: 0.10.0
libtpu: 0.0.40
codegen_flags: <defaults>
</compile_context>

<pallas_src>
import math
import functools

import jax
import jax.numpy as jnp
from jax import lax
from jax.experimental import pallas as pl
from jax.experimental.pallas import tpu as pltpu


def get_positional_encoding(d_model: int, max_len: int = 5000) -> jnp.ndarray:
    """JAX port of the PyTorch helper. Returns [max_len, d_model] float32.

    NOTE: like the upstream PyTorch code, this assumes an even d_model.
    """
    position = jnp.arange(max_len, dtype=jnp.float32)[:, None]              # [L, 1]
    two_i = jnp.arange(0, d_model, 2, dtype=jnp.float32)                    # [D/2]
    div_term = jnp.exp(two_i * -(math.log(10000.0) / d_model))              # [D/2]
    enc = jnp.zeros((max_len, d_model), dtype=jnp.float32)
    enc = enc.at[:, 0::2].set(jnp.sin(position * div_term))
    enc = enc.at[:, 1::2].set(jnp.cos(position * div_term))
    return enc


def _embed_pe_kernel(ids_ref, table_hbm, pe_ref, out_ref, table_vmem, dma_sem, *,
                     scale, n_vocab, batch, seq_tile, use_onehot):
    """One grid step = one tile of `seq_tile * batch` tokens.

    ids_ref    : [T, 1] int32 VMEM block of flat token ids for this tile.
    table_hbm  : [V_pad, D] raw HBM ref (memory_space=pl.ANY).
    pe_ref     : [seq_tile, D] f32 positional-encoding rows for this tile.
    out_ref    : [T, D] output block.
    table_vmem : [V_pad, D] scratch — resident, single-buffered table copy.
    dma_sem    : DMA semaphore for the one-shot table copy.
    """
    # One-shot table residency: copy HBM -> VMEM on the first grid step only.
    # (Grid axis is "arbitrary" => sequential, so this guard is safe; scratch
    #  persists across the remaining steps.)
    @pl.when(pl.program_id(0) == 0)
    def _():
        cp = pltpu.make_async_copy(table_hbm, table_vmem, dma_sem.at[0])
        cp.start()
        cp.wait()

    d_model = out_ref.shape[-1]
    t = seq_tile * batch                                   # tokens in this tile

    # Clamp OOB ids (PyTorch raises; we clamp instead of silently mis-reading).
    ids = jnp.clip(ids_ref[...], 0, n_vocab - 1)           # (t, 1) int32

    if use_onehot:
        # Gather-as-matmul: one_hot(ids) @ table on the (otherwise idle) MXU.
        v_pad = table_vmem.shape[0]
        onehot = ids == lax.broadcasted_iota(jnp.int32, (t, v_pad), 1)   # (t, V_pad)
        rows = jnp.dot(onehot.astype(table_vmem.dtype), table_vmem[...],
                       preferred_element_type=jnp.float32)               # (t, D) f32
    else:
        # Vectorized VMEM gather (medium vocab that still fits in VMEM).
        rows = jnp.take(table_vmem[...], ids.reshape(t), axis=0
                        ).astype(jnp.float32)                            # (t, D) f32

    # Hoisted PE broadcast: one (seq_tile, D) load, one broadcast over batch,
    # one fused tile-wide scale+add, one dense (t, D) store.
    pe = pe_ref[...].astype(jnp.float32)                                 # (seq_tile, D)
    pe_b = jnp.broadcast_to(pe[:, None, :], (seq_tile, batch, d_model)
                            ).reshape(t, d_model)

    out_ref[...] = (rows * scale + pe_b).astype(out_ref.dtype)


def _vmem_capacity_bytes() -> int:
    try:
        return int(pltpu.get_tpu_info().vmem_capacity_bytes)
    except Exception:
        return 64 << 20        # conservative default (v7x per-TensorCore VMEM)


def _tile_vmem_bytes(seq_tile, batch, v_pad, d_model, table_bytes, out_bytes,
                     use_onehot):
    """Rough per-step VMEM footprint for the chosen tile."""
    t = seq_tile * batch
    b = v_pad * d_model * table_bytes          # resident table (single copy, scratch)
    b += 2 * t * d_model * out_bytes           # output blocks (double-buffered)
    b += 2 * seq_tile * d_model * 4            # PE blocks (f32, double-buffered)
    b += 2 * t * 512                           # ids blocks ((t,1) int32, lane-padded)
    b += 2 * t * d_model * 4                   # live f32 intermediates (rows, pe_b)
    if use_onehot:
        b += 2 * t * v_pad * 4                 # one-hot + compare temporaries
    return b


def _choose_seq_tile(seq_len, batch, v_pad, d_model, table_bytes, out_bytes,
                     use_onehot, budget, max_rows=4096):
    """Largest sequence tile (multiple of 8 dividing seq_len, or seq_len itself)
    whose per-step footprint fits the VMEM budget."""
    cands = [c for c in range(8, seq_len + 1, 8) if seq_len % c == 0] or [seq_len]
    fitting = [c for c in cands
               if c * batch <= max_rows
               and _tile_vmem_bytes(c, batch, v_pad, d_model, table_bytes,
                                    out_bytes, use_onehot) <= budget]
    return max(fitting) if fitting else min(cands)


def embedding_with_positional_encoding(x_ids, emb_table, pe_table, *,
                                       seq_tile=None, gather="auto"):
    """x_ids: [S, B] int32, emb_table: [V, D], pe_table: [max_len, D] f32."""
    S, B = x_ids.shape
    V, D = emb_table.shape
    N = S * B
    assert pe_table.shape[0] >= S and pe_table.shape[1] == D

    # Gather strategy: embedding-as-matmul for small vocab (MXU is idle here),
    # vectorized jnp.take for medium vocab.
    if gather == "auto":
        gather = "onehot" if V <= 1024 else "take"
    use_onehot = gather == "onehot"

    # Pad the vocab axis to a sublane multiple; padded rows are never selected
    # because ids are clamped to [0, V-1] in-kernel.
    v_pad = ((V + 7) // 8) * 8
    table = emb_table if v_pad == V else jnp.pad(emb_table, ((0, v_pad - V), (0, 0)))

    out_dtype = emb_table.dtype
    table_bytes = jnp.dtype(table.dtype).itemsize
    out_bytes = jnp.dtype(out_dtype).itemsize

    vmem_cap = _vmem_capacity_bytes()
    budget = (2 * vmem_cap) // 3
    if seq_tile is None:
        seq_tile = _choose_seq_tile(S, B, v_pad, D, table_bytes, out_bytes,
                                    use_onehot, budget)
    assert S % seq_tile == 0, "seq_tile must divide seq_len"
    assert seq_tile == S or seq_tile % 8 == 0, "seq_tile must be a multiple of 8 (or == S)"
    tokens_per_tile = seq_tile * B

    tile_bytes = _tile_vmem_bytes(seq_tile, B, v_pad, D, table_bytes, out_bytes,
                                  use_onehot)
    vmem_limit = int(min(vmem_cap, max(32 << 20, 2 * tile_bytes + (4 << 20))))

    scale = float(math.sqrt(D))
    ids_col = x_ids.reshape(N, 1).astype(jnp.int32)      # lane-ready id column
    pe_slab = pe_table[:S].astype(jnp.float32)           # [S, D], hoisted once
    # NOTE: production d_model >= 128 gives fully lane-dense (unmasked) output
    # stores; the D=32 demo is below a lane and pays masked stores (tiny here).

    kernel = functools.partial(
        _embed_pe_kernel,
        scale=scale, n_vocab=V, batch=B, seq_tile=seq_tile, use_onehot=use_onehot,
    )

    out_flat = pl.pallas_call(
        kernel,
        out_shape=jax.ShapeDtypeStruct((N, D), out_dtype),
        grid_spec=pltpu.PrefetchScalarGridSpec(
            num_scalar_prefetch=0,
            grid=(S // seq_tile,),                        # one step per token tile
            in_specs=[
                # Per-tile token ids as a small VMEM block (vectorizable).
                pl.BlockSpec((tokens_per_tile, 1), lambda i: (i, 0)),
                # Embedding table stays in HBM; copied once into scratch.
                pl.BlockSpec(memory_space=pl.ANY),
                # Contiguous positional-encoding rows for this tile.
                pl.BlockSpec((seq_tile, D), lambda i: (i, 0)),
            ],
            out_specs=pl.BlockSpec((tokens_per_tile, D), lambda i: (i, 0)),
            scratch_shapes=[
                pltpu.VMEM((v_pad, D), table.dtype),      # resident table (1x, no double-buffer)
                pltpu.SemaphoreType.DMA((1,)),            # one-shot table copy semaphore
            ],
        ),
        compiler_params=pltpu.CompilerParams(
            # Sequential grid required for the step-0 table residency copy;
            # measured "parallel" vs "arbitrary" is perf-neutral on v5e/v6e.
            dimension_semantics=("arbitrary",),
            vmem_limit_bytes=vmem_limit,
        ),
    )(ids_col, table, pe_slab)

    return out_flat.reshape(S, B, D)


if __name__ == "__main__":
    # Small, deterministic setup (seq_len == batch so the PyTorch x.shape[1]
    # slice of the PE buffer coincides with the intended x.shape[0] slice).
    d_model = 32
    n_vocab = 50
    max_len = 64
    seq_len = 16
    batch = 16

    key = jax.random.PRNGKey(0)
    k_emb, k_ids = jax.random.split(key)

    # nn.Embedding(n_vocab, d_model).weight ~ N(0, 1)
    emb_table = jax.random.normal(k_emb, (n_vocab, d_model), dtype=jnp.float32)
    pe_table = get_positional_encoding(d_model, max_len)

    x_ids = jax.random.randint(k_ids, (seq_len, batch), 0, n_vocab, dtype=jnp.int32)

    # seq_tile=8 -> 2 grid steps of 128 tokens each (exercises the pipeline and
    # the step-0 table-residency path).
    out = embedding_with_positional_encoding(x_ids, emb_table, pe_table, seq_tile=8)
    out = jax.block_until_ready(out)

    # Pure-JAX reference check.
    ref = emb_table[x_ids] * math.sqrt(d_model) + pe_table[:seq_len][:, None, :]
    assert out.shape == (seq_len, batch, d_model)
    assert jnp.allclose(out, ref, atol=1e-5, rtol=1e-5)

    print("KERNEL_OK")
</pallas_src>

<mosaic_0001>
module attributes {stable_mosaic.version = 11 : i64} {
  func.func @_embed_pe_kernel(%arg0: i32, %arg1: memref<128x1xi32, #tpu.memory_space<vmem>>, %arg2: memref<56x32xf32, #tpu.memory_space<any>>, %arg3: memref<8x32xf32, #tpu.memory_space<vmem>>, %arg4: memref<128x32xf32, #tpu.memory_space<vmem>>, %arg5: memref<56x32xf32, #tpu.memory_space<vmem>>, %arg6: memref<1x!tpu.dma_semaphore, #tpu.memory_space<semaphore_mem>>) attributes {dimension_semantics = [#tpu.dimension_semantics<arbitrary>], iteration_bounds = array<i64: 2>, scalar_prefetch = 0 : i64, scratch_operands = 2 : i64, tpu.core_type = #tpu.core_type<tc>, window_params = [{transform_indices = @transform_0, window_bounds = array<i64: 128, 1>}, {}, {transform_indices = @transform_2, window_bounds = array<i64: 8, 32>}, {transform_indices = @transform_3, window_bounds = array<i64: 128, 32>}]} {
    %c0_i32 = arith.constant 0 : i32
    %0 = arith.cmpi eq, %arg0, %c0_i32 : i32
    %1 = arith.extui %0 : i1 to i32
    %c0_i32_0 = arith.constant 0 : i32
    %2 = arith.cmpi ne, %1, %c0_i32_0 : i32
    scf.if %2 {
      %c0_i32_10 = arith.constant 0 : i32
      %24 = tpu.memref_slice %arg6[%c0_i32_10] : memref<1x!tpu.dma_semaphore, #tpu.memory_space<semaphore_mem>> -> memref<1x!tpu.dma_semaphore, #tpu.memory_space<semaphore_mem>>
      %25 = tpu.memref_squeeze %24 : memref<1x!tpu.dma_semaphore, #tpu.memory_space<semaphore_mem>> -> memref<!tpu.dma_semaphore, #tpu.memory_space<semaphore_mem>>
      tpu.enqueue_dma source(%arg2 : memref<56x32xf32, #tpu.memory_space<any>>) target(%arg5 : memref<56x32xf32, #tpu.memory_space<vmem>>) target_semaphore(%25 : memref<!tpu.dma_semaphore, #tpu.memory_space<semaphore_mem>>)
      %c0_i32_11 = arith.constant 0 : i32
      %26 = tpu.memref_slice %arg6[%c0_i32_11] : memref<1x!tpu.dma_semaphore, #tpu.memory_space<semaphore_mem>> -> memref<1x!tpu.dma_semaphore, #tpu.memory_space<semaphore_mem>>
      %27 = tpu.memref_squeeze %26 : memref<1x!tpu.dma_semaphore, #tpu.memory_space<semaphore_mem>> -> memref<!tpu.dma_semaphore, #tpu.memory_space<semaphore_mem>>
      tpu.wait_dma2 semaphore(%27 : memref<!tpu.dma_semaphore, #tpu.memory_space<semaphore_mem>>) src(%arg2 : memref<56x32xf32, #tpu.memory_space<any>>) dst(%arg5 : memref<56x32xf32, #tpu.memory_space<vmem>>)
    } else {
    }
    %c0 = arith.constant 0 : index
    %c0_1 = arith.constant 0 : index
    %3 = vector.load %arg1[%c0, %c0_1] : memref<128x1xi32, #tpu.memory_space<vmem>>, vector<128x1xi32>
    %c0_i32_2 = arith.constant 0 : i32
    %c49_i32 = arith.constant 49 : i32
    %4 = vector.broadcast %c0_i32_2 : i32 to vector<128x1xi32>
    %5 = arith.maxsi %4, %3 : vector<128x1xi32>
    %6 = vector.broadcast %c49_i32 : i32 to vector<128x1xi32>
    %7 = arith.minsi %6, %5 : vector<128x1xi32>
    %8 = tpu.iota {dimensions = array<i32: 1>} : vector<128x56xi32>
    %9 = vector.broadcast %7 : vector<128x1xi32> to vector<128x56xi32>
    %10 = arith.cmpi eq, %9, %8 : vector<128x56xi32>
    %11 = arith.extui %10 : vector<128x56xi1> to vector<128x56xi32>
    %12 = arith.sitofp %11 : vector<128x56xi32> to vector<128x56xf32>
    %c0_3 = arith.constant 0 : index
    %c0_4 = arith.constant 0 : index
    %13 = vector.load %arg5[%c0_3, %c0_4] : memref<56x32xf32, #tpu.memory_space<vmem>>, vector<56x32xf32>
    %cst = arith.constant dense<0.000000e+00> : vector<128x32xf32>
    %14 = tpu.matmul %12, %13, %cst {dimension_numbers = #tpu.dot_dimension_numbers<[1], [0], [0], [1], [0, 0, 1, 1], [], []>} : vector<128x56xf32>, vector<56x32xf32>, vector<128x32xf32> -> vector<128x32xf32>
    %c0_5 = arith.constant 0 : index
    %c0_6 = arith.constant 0 : index
    %15 = vector.load %arg3[%c0_5, %c0_6] : memref<8x32xf32, #tpu.memory_space<vmem>>, vector<8x32xf32>
    %16 = vector.shape_cast %15 : vector<8x32xf32> to vector<8x1x32xf32>
    %17 = vector.shape_cast %16 : vector<8x1x32xf32> to vector<8x1x32xf32>
    %18 = vector.broadcast %17 : vector<8x1x32xf32> to vector<8x16x32xf32>
    %19 = vector.shape_cast %18 : vector<8x16x32xf32> to vector<128x32xf32>
    %cst_7 = arith.constant 5.65685415 : f32
    %20 = vector.broadcast %cst_7 : f32 to vector<128x32xf32>
    %21 = arith.mulf %14, %20 : vector<128x32xf32>
    %22 = arith.addf %21, %19 : vector<128x32xf32>
    %c0_8 = arith.constant 0 : index
    %c0_9 = arith.constant 0 : index
    %23 = vector.load %arg4[%c0_8, %c0_9] : memref<128x32xf32, #tpu.memory_space<vmem>>, vector<128x32xf32>
    tpu.vector_store %arg4[%c0_8, %c0_9], %22 {strides = array<i32>} : memref<128x32xf32, #tpu.memory_space<vmem>>, vector<128x32xf32>,
    return
  }
  func.func @transform_0(%arg0: i32) -> (i32, i32) {
    %c0_i32 = arith.constant 0 : i32
    %c0_i32_0 = arith.constant 0 : i32
    return %arg0, %c0_i32 : i32, i32
  }
  func.func @transform_2(%arg0: i32) -> (i32, i32) {
    %c0_i32 = arith.constant 0 : i32
    %c0_i32_0 = arith.constant 0 : i32
    return %arg0, %c0_i32 : i32, i32
  }
  func.func @transform_3(%arg0: i32) -> (i32, i32) {
    %c0_i32 = arith.constant 0 : i32
    %c0_i32_0 = arith.constant 0 : i32
    return %arg0, %c0_i32 : i32, i32
  }
}

</mosaic_0001>

<bundles_post_ra>
// kernel: tpu_custom_call.1
= control target key start
LH: loop header
LB: loop body
LE: loop exit
PB: predicated region body
PF: predicated region fallthrough
CT: control target
= control target key end

     0   :  { %s1000_s12 = smov 0   ;;  %s1142_s0 = inlined_call_operand.vmem [shape: s32[256,1], index: 0, kind: input, shape index: {}]   ;;  %s1143_s1 = inlined_call_operand.vmem [shape: f32[56,32], index: 1, kind: input, shape index: {}]   ;;  %s1144_s2 = inlined_call_operand.vmem [shape: f32[16,32], index: 2, kind: input, shape index: {}]   ;;  %s1145_s3 = inlined_call_operand.vmem [shape: f32[256,32], index: 3, kind: output, shape index: {}]  }
   0x1 LB: > { %s827_s13 = sadd.s32 4294967295, %s975_s12   ;;  %p831_p0 = scmp.ge.s32.totalorder %s975_s12, 1  ;;  %s975_s12 = sphi %s1000_s12, %s13_s12  }
   0x2   : > { %p123_p1 = scmp.lt.s32.totalorder %s975_s12, 3 }
   0x4   : > { %p124_p2 = pnand %p831_p0, %p123_p1 }
   0x5   : > { %s832_s14 = sshll.u32 (!%p124_p2), %s827_s13, 4  ;;  %p155_p3 = scmp.lt.s32.totalorder (!%p124_p2), %s827_s13, 1 }
   0x6   : > { %127 = sbr.rel (%p124_p2) target bundleno = 405 (0x195), region = 28  ;;  %p150_p4 = scmp.lt.s32.totalorder (!%p124_p2), %s832_s14, 31 }
   0x7   : > { %p837_p5 = scmp.ne.s32.totalorder (!%p124_p2), %s827_s13, 0 }
   0xd   : > { %s156_s15 = scalar_select %p155_p3, %s827_s13, 1 }
   0xe   : > { %s1147_s14 = smov (!%p150_p4, %s832_s14), 31  ;;  %168 = sbr.rel (%p837_p5) target bundleno = 24 (0x18), region = 32 }
   0xf   : > { %s834_s16 = sshll.u32 %s156_s15, 3  ;;  %s833_s17 = sshll.u32 %s1147_s14, 3  ;;  %v201_v0 = vld [vmem:[%s1143_s1] sm:$0xff] (!%p837_p5)  ;;  %v203_v1 = vld [vmem:[%s1143_s1 + $0x8] sm:$0xff] (!%p837_p5)  ;;  %v205_v2 = vld [vmem:[%s1143_s1 + $0x10] sm:$0xff] (!%p837_p5) }
  0x10   : > { %s1011_s20 = scalar_lea.vmem %s1144_s2, %s834_s16  ;;  %s1016_s23 = scalar_lea.vmem %s1142_s0, %s833_s17  ;;  %202 = vst [vmem:[#allocation2] sm:$0xff] (!%p837_p5), %v201_v0  ;;  %204 = vst [vmem:[#allocation2 + $0x8] sm:$0xff] (!%p837_p5), %v203_v1  ;;  %v207_v3 = vld [vmem:[%s1143_s1 + $0x18] sm:$0xff] (!%p837_p5)  ;;  %v209_v4 = vld [vmem:[%s1143_s1 + $0x20] sm:$0xff] (!%p837_p5) }
  0x11   : > { %s1021_s26 = scalar_lea.vmem %s1145_s3, %s833_s17  ;;  %206 = vst [vmem:[#allocation2 + $0x10] sm:$0xff] (!%p837_p5), %v205_v2  ;;  %v211_v5 = vld [vmem:[%s1143_s1 + $0x28] sm:$0xff] (!%p837_p5)  ;;  %208 = vst [vmem:[#allocation2 + $0x18] sm:$0xff] (!%p837_p5), %v207_v3  ;;  %v213_v6 = vld [vmem:[%s1143_s1 + $0x30] sm:$0xff] (!%p837_p5) }
  0x12   : > { %210 = vst [vmem:[#allocation2 + $0x20] sm:$0xff] (!%p837_p5), %v209_v4  ;;  %212 = vst [vmem:[#allocation2 + $0x28] sm:$0xff] (!%p837_p5), %v211_v5 }
  0x13   : > { %214 = vst [vmem:[#allocation2 + $0x30] sm:$0xff] (!%p837_p5), %v213_v6 }
  0x15   : > { %222 = vsyncadd [#allocation3], 896 }
  0x16   : > { %971 = dma.done.wait [#allocation3], 896 }
  0x17   : > { %972 = vsyncadd [#allocation3], 4294966400 }
  0x18 PF: > { %v227_v7 = vld [vmem:[%s1016_s23 + $0x8] sm:$0xff]  ;;  %v226_v8 = vld [vmem:[%s1016_s23] sm:$0xff]  ;;  %v977_v10 = vmov 0   ;;  %v236_v12 = vld [vmem:[%s1016_s23 + $0x50] sm:$0xff]  ;;  %v306_v2 = vlaneseq  ;;  %v978_v6 = vmov 0.0  }
  0x19   : > { %v235_v9 = vld [vmem:[%s1016_s23 + $0x48] sm:$0xff]  ;;  %966 = vset.pattern.permute.xlu1 %v977_v10  ;;  %965 = vset.pattern.permute.xlu0 %v977_v10  ;;  %vm244_vm0 = vcmp.gt.s32.totalorder %v227_v7, 0  ;;  %vm242_vm1 = vcmp.gt.s32.totalorder %v226_v8, 0  ;;  %v234_v11 = vld [vmem:[%s1016_s23 + $0x40] sm:$0xff]  ;;  %v228_v16 = vld [vmem:[%s1016_s23 + $0x10] sm:$0xff]  ;;  %vm262_vm8 = vcmp.gt.s32.totalorder %v236_v12, 0 }
  0x1a   : > { %vm260_vm2 = vcmp.gt.s32.totalorder %v235_v9, 0  ;;  %v245_v13 = vsel %vm244_vm0, %v227_v7, 0  ;;  %v243_v14 = vsel %vm242_vm1, %v226_v8, 0  ;;  %vm258_vm3 = vcmp.gt.s32.totalorder %v234_v11, 0  ;;  %v237_v17 = vld [vmem:[%s1016_s23 + $0x58] sm:$0xff]  ;;  %v238_v26 = vld [vmem:[%s1016_s23 + $0x60] sm:$0xff] }
  0x1b   : > { %v261_v15 = vsel %vm260_vm2, %v235_v9, 0  ;;  %vm276_vm4 = vcmp.lt.s32.totalorder %v245_v13, 49  ;;  %vm274_vm5 = vcmp.lt.s32.totalorder %v243_v14, 49  ;;  %v259_v18 = vsel %vm258_vm3, %v234_v11, 0  ;;  %v229_v19 = vld [vmem:[%s1016_s23 + $0x18] sm:$0xff]  ;;  %v230_v27 = vld [vmem:[%s1016_s23 + $0x20] sm:$0xff] }
  0x1c   : > { %vm292_vm6 = vcmp.lt.s32.totalorder %v261_v15, 49  ;;  %v277_v20 = vsel %vm276_vm4, %v245_v13, 49  ;;  %v275_v21 = vsel %vm274_vm5, %v243_v14, 49  ;;  %vm290_vm7 = vcmp.lt.s32.totalorder %v259_v18, 49  ;;  %v239_v32 = vld [vmem:[%s1016_s23 + $0x68] sm:$0xff]  ;;  %v240_v36 = vld [vmem:[%s1016_s23 + $0x70] sm:$0xff] }
  0x1d   : > { %312 = vperm.xlu1 %966, %v277_v20   ;;  %309 = vperm.xlu0 %965, %v275_v21   ;;  %v293_v22 = vsel %vm292_vm6, %v261_v15, 49  ;;  %vm246_vm9 = vcmp.gt.s32.totalorder %v228_v16, 0  ;;  %vm264_vm10 = vcmp.gt.s32.totalorder %v237_v17, 0  ;;  %v291_v23 = vsel %vm290_vm7, %v259_v18, 49  ;;  %v231_v33 = vld [vmem:[%s1016_s23 + $0x28] sm:$0xff]  ;;  %v232_v39 = vld [vmem:[%s1016_s23 + $0x30] sm:$0xff] }
  0x1e   : > { %v263_v24 = vsel %vm262_vm8, %v236_v12, 0  ;;  %v247_v25 = vsel %vm246_vm9, %v228_v16, 0  ;;  %vm248_vm11 = vcmp.gt.s32.totalorder %v229_v19, 0  ;;  %v265_v28 = vsel %vm264_vm10, %v237_v17, 0  ;;  %v404_v40 = vld [vmem:[#allocation2] sm:$0xff]  ;;  %v405_v41 = vld [vmem:[#allocation2 + $0x8] sm:$0xff] }
  0x1f   : > { %vm294_vm12 = vcmp.lt.s32.totalorder %v263_v24, 49  ;;  %vm278_vm13 = vcmp.lt.s32.totalorder %v247_v25, 49  ;;  %v249_v29 = vsel %vm248_vm11, %v229_v19, 0  ;;  %vm266_vm14 = vcmp.gt.s32.totalorder %v238_v26, 0  ;;  %v406_v42 = vld [vmem:[#allocation2 + $0x10] sm:$0xff]  ;;  %v407_v43 = vld [vmem:[#allocation2 + $0x18] sm:$0xff] }
  0x20   : > { %vm250_vm15 = vcmp.gt.s32.totalorder %v230_v27, 0  ;;  %v295_v30 = vsel %vm294_vm12, %v263_v24, 49  ;;  %v279_v31 = vsel %vm278_vm13, %v247_v25, 49  ;;  %vm296_vm0 = vcmp.lt.s32.totalorder %v265_v28, 49  ;;  %v241_v49 = vld [vmem:[%s1016_s23 + $0x78] sm:$0xff]  ;;  %v408_v52 = vld [vmem:[#allocation2 + $0x20] sm:$0xff] }
  0x21   : > { %336 = vperm.xlu1 %966, %v293_v22   ;;  %333 = vperm.xlu0 %965, %v291_v23   ;;  %vm280_vm1 = vcmp.lt.s32.totalorder %v249_v29, 49  ;;  %v267_v34 = vsel %vm266_vm14, %v238_v26, 0  ;;  %v251_v35 = vsel %vm250_vm15, %v230_v27, 0  ;;  %vm268_vm2 = vcmp.gt.s32.totalorder %v239_v32, 0  ;;  %v233_v50 = vld [vmem:[%s1016_s23 + $0x38] sm:$0xff]  ;;  %v409_v53 = vld [vmem:[#allocation2 + $0x28] sm:$0xff] }
  0x22   : > { %vm252_vm3 = vcmp.gt.s32.totalorder %v231_v33, 0  ;;  %v297_v37 = vsel %vm296_vm0, %v265_v28, 49  ;;  %v281_v38 = vsel %vm280_vm1, %v249_v29, 49  ;;  %vm298_vm4 = vcmp.lt.s32.totalorder %v267_v34, 49  ;;  %v410_v63 = vld [vmem:[#allocation2 + $0x30] sm:$0xff] }
  0x23   : > { %vm282_vm5 = vcmp.lt.s32.totalorder %v251_v35, 49  ;;  %v269_v44 = vsel %vm268_vm2, %v239_v32, 0  ;;  %v253_v45 = vsel %vm252_vm3, %v231_v33, 0  ;;  %vm270_vm6 = vcmp.gt.s32.totalorder %v240_v36, 0 }
  0x24   : > { %vm254_vm7 = vcmp.gt.s32.totalorder %v232_v39, 0  ;;  %v934_v46 = vpack.c.bf16 %v405_v41, %v404_v40  ;;  %v299_v47 = vsel %vm298_vm4, %v267_v34, 49  ;;  %v283_v48 = vsel %vm282_vm5, %v251_v35, 49 }
  0x25   : > { %339 = vperm.xlu1 %966, %v295_v30   ;;  %315 = vperm.xlu0 %965, %v279_v31   ;;  %v938_v51 = vpack.c.bf16 %v407_v43, %v406_v42  ;;  %vm300_vm8 = vcmp.lt.s32.totalorder %v269_v44, 49  ;;  %vm284_vm9 = vcmp.lt.s32.totalorder %v253_v45, 49  ;;  %v271_v54 = vsel %vm270_vm6, %v240_v36, 0  ;;  %v605_v42 = vld [vmem:[%s1011_s20] sm:$0xff] }
  0x26   : > { %935 = vmatprep.subr.bf16.mxu0 %v934_v46  ;;  %946 = vmatprep.subr.bf16.mxu1 %v934_v46  ;;  %v255_v55 = vsel %vm254_vm7, %v232_v39, 0  ;;  %vm272_vm10 = vcmp.gt.s32.totalorder %v241_v49, 0  ;;  %vm256_vm11 = vcmp.gt.s32.totalorder %v233_v50, 0  ;;  %v301_v56 = vsel %vm300_vm8, %v269_v44, 49 }
  0x27   : > { %937 = vmatpush3.bf16.msra.mxu0 %v934_v46  ;;  %950 = vmatpush3.bf16.msra.mxu1 %v934_v46  ;;  %v285_v57 = vsel %vm284_vm9, %v253_v45, 49  ;;  %v942_v58 = vpack.c.bf16 %v409_v53, %v408_v52  ;;  %vm302_vm12 = vcmp.lt.s32.totalorder %v271_v54, 49  ;;  %vm286_vm13 = vcmp.lt.s32.totalorder %v255_v55, 49 }
  0x28   : > { %939 = vmatprep.subr.bf16.mxu0 %v938_v51  ;;  %947 = vmatprep.subr.bf16.mxu1 %v938_v51  ;;  %v273_v59 = vsel %vm272_vm10, %v241_v49, 0  ;;  %v257_v60 = vsel %vm256_vm11, %v233_v50, 0  ;;  %v303_v61 = vsel %vm302_vm12, %v271_v54, 49  ;;  %v287_v62 = vsel %vm286_vm13, %v255_v55, 49 }
  0x29   : > { %342 = vperm.xlu1 %966, %v297_v37   ;;  %318 = vperm.xlu0 %965, %v281_v38   ;;  %vm304_vm14 = vcmp.lt.s32.totalorder %v273_v59, 49  ;;  %vm288_vm15 = vcmp.lt.s32.totalorder %v257_v60, 49  ;;  %v1061_v3 = vand.u32 127, %v306_v2  ;;  %vm411_vm0 = vcmask 457728  }
  0x2a   : > { %v305_v0 = vsel %vm304_vm14, %v273_v59, 49  ;;  %v289_v1 = vsel %vm288_vm15, %v257_v60, 49  ;;  %v979_v37 = vmov 1966171168   ;;  %v612_v40 = vshrl.u32 %v306_v2, 7 }
  0x2b   : > { %941 = vmatpush3.bf16.msra.mxu0 %v938_v51  ;;  %951 = vmatpush3.bf16.msra.mxu1 %v938_v51  ;;  %v609_v38 = vunpack.c.l.s4 %v979_v37  ;;  %v607_v44 = vcombine.high %v605_v42, %v605_v42 }
  0x2c   : > { %943 = vmatprep.subr.bf16.mxu0 %v942_v58  ;;  %948 = vmatprep.subr.bf16.mxu1 %v942_v58  ;;  %v1097_v46 = vsub.s32 0, %v612_v40 }
  0x2d   : > { %345 = vperm.xlu1 %966, %v299_v47   ;;  %321 = vperm.xlu0 %965, %v283_v48   ;;  %v610_v39 = vunpack.c.0.s8 %v609_v38 }
  0x2f   : > { %945 = vmatpush3.bf16.msra.mxu0 %v942_v58  ;;  %952 = vmatpush3.bf16.msra.mxu1 %v942_v58  ;;  %v613_v41 = vsub.s32 %v610_v39, %v612_v40 }
  0x30   : > { %908 = vmatprep.subr.mxu0 %v410_v63  ;;  %949 = vmatprep.subr.mxu1 %v410_v63 }
  0x31   : > { %348 = vperm.xlu1 %966, %v301_v56   ;;  %324 = vperm.xlu0 %965, %v285_v57   ;;  %v614_v43 = vrot.slane %v605_v42, %v613_v41  ;;  %v621_v47 = vrot.slane %v607_v44, %v613_v41 }
  0x33   : > { %909 = vmatpush3.msra.mxu0 %v410_v63  ;;  %953 = vmatpush3.msra.mxu1 %v410_v63  ;;  %v630_v45 = vrot.slane %v614_v43, %v613_v41  ;;  %v637_v49 = vrot.slane %v621_v47, %v613_v41  ;;  %v622_v54 = vcombine.high %v614_v43, %v614_v43 }
  0x34   : > { %v623_v55 = vcombine.high %v621_v47, %v621_v47 }
  0x35   : > { %351 = vperm.xlu1 %966, %v303_v61   ;;  %327 = vperm.xlu0 %965, %v287_v62   ;;  %v659_v48 = vrot.slane %v630_v45, %v1097_v46  ;;  %v675_v57 = vrot.slane %v637_v49, %v1097_v46  ;;  %v644_v63 = vrot.slane %v622_v54, %v613_v41 }
  0x39   : > { %354 = vperm.xlu1 %966, %v305_v0   ;;  %330 = vperm.xlu0 %965, %v289_v1   ;;  %v651_v0 = vrot.slane %v623_v55, %v613_v41 }
  0x9c   : > { %v313_v4 = vpop.permute.xlu1 %312  ;;  %v310_v5 = vpop.permute.xlu0 %309 }
  0x9d   : > { %vm357_vm1 = vcmp.eq.s32.totalorder %v313_v4, %v1061_v3  ;;  %vm356_vm2 = vcmp.eq.s32.totalorder %v310_v5, %v1061_v3  ;;  %v679_v4 = vrot.slane %v651_v0, %v1097_v46 }
  0x9e   : > { %v839_v7 = vsel %vm357_vm1, 1.0, %v978_v6  ;;  %v838_v8 = vsel %vm356_vm2, 1.0, %v978_v6 }
  0x9f   : > { %910 = vmatprep.mubr.msk.f32.mxu0 %vm411_vm0, %v838_v8 }
  0xa0   : > { %v337_v9 = vpop.permute.xlu1 %336  ;;  %911 = vmatmul.mubr.msk.f32.vlgmr.msra.gmra.mrb[0].mxu0 %vm411_vm0, %v839_v7  ;;  %v334_v10 = vpop.permute.xlu0 %333 }
  0xa1   : > { %vm365_vm3 = vcmp.eq.s32.totalorder %v337_v9, %v1061_v3  ;;  %vm364_vm4 = vcmp.eq.s32.totalorder %v334_v10, %v1061_v3 }
  0xa2   : > { %v847_v11 = vsel %vm365_vm3, 1.0, %v978_v6  ;;  %v846_v12 = vsel %vm364_vm4, 1.0, %v978_v6 }
  0xa3   : > { %922 = vmatprep.mubr.msk.f32.mxu1 %vm411_vm0, %v846_v12 }
  0xa4   : > { %v340_v13 = vpop.permute.xlu1 %339  ;;  %923 = vmatmul.mubr.msk.f32.vlgmr.msra.gmra.mrb[0].mxu1 %vm411_vm0, %v847_v11  ;;  %v316_v14 = vpop.permute.xlu0 %315 }
  0xa5   : > { %vm366_vm5 = vcmp.eq.s32.totalorder %v340_v13, %v1061_v3  ;;  %vm358_vm6 = vcmp.eq.s32.totalorder %v316_v14, %v1061_v3 }
  0xa6   : > { %v848_v15 = vsel %vm366_vm5, 1.0, %v978_v6  ;;  %v840_v16 = vsel %vm358_vm6, 1.0, %v978_v6 }
  0xa7   : > { %913 = vmatprep.mubr.msk.f32.mxu0 %vm411_vm0, %v840_v16  ;;  %925 = vmatprep.mubr.msk.f32.mxu1 %vm411_vm0, %v848_v15  ;;  %v652_v15 = vcombine.high %v630_v45, %v630_v45  ;;  %v653_v16 = vcombine.high %v637_v49, %v637_v49 }
  0xa8   : > { %v343_v17 = vpop.permute.xlu1 %342  ;;  %v319_v18 = vpop.permute.xlu0 %318 }
  0xa9   : > { %vm367_vm7 = vcmp.eq.s32.totalorder %v343_v17, %v1061_v3  ;;  %vm359_vm8 = vcmp.eq.s32.totalorder %v319_v18, %v1061_v3 }
  0xaa   : > { %v849_v19 = vsel %vm367_vm7, 1.0, %v978_v6  ;;  %v841_v20 = vsel %vm359_vm8, 1.0, %v978_v6 }
  0xab   : > { %914 = vmatmul.mubr.msk.f32.gmra.mrb[2].mxu0 %vm411_vm0, %v841_v20  ;;  %926 = vmatmul.mubr.msk.f32.gmra.mrb[2].mxu1 %vm411_vm0, %v849_v19  ;;  %v667_v19 = vrot.slane %v652_v15, %v1097_v46  ;;  %v683_v20 = vrot.slane %v653_v16, %v1097_v46 }
  0xac   : > { %v346_v21 = vpop.permute.xlu1 %345  ;;  %v322_v22 = vpop.permute.xlu0 %321 }
  0xad   : > { %vm368_vm9 = vcmp.eq.s32.totalorder %v346_v21, %v1061_v3  ;;  %vm360_vm10 = vcmp.eq.s32.totalorder %v322_v22, %v1061_v3 }
  0xae   : > { %v850_v23 = vsel %vm368_vm9, 1.0, %v978_v6  ;;  %v842_v24 = vsel %vm360_vm10, 1.0, %v978_v6 }
  0xaf   : > { %916 = vmatprep.mubr.msk.f32.mxu0 %vm411_vm0, %v842_v24  ;;  %928 = vmatprep.mubr.msk.f32.mxu1 %vm411_vm0, %v850_v23 }
  0xb0   : > { %v349_v25 = vpop.permute.xlu1 %348  ;;  %v325_v26 = vpop.permute.xlu0 %324 }
  0xb1   : > { %vm369_vm11 = vcmp.eq.s32.totalorder %v349_v25, %v1061_v3  ;;  %vm361_vm12 = vcmp.eq.s32.totalorder %v325_v26, %v1061_v3 }
  0xb2   : > { %v851_v27 = vsel %vm369_vm11, 1.0, %v978_v6  ;;  %v843_v28 = vsel %vm361_vm12, 1.0, %v978_v6 }
  0xb3   : > { %917 = vmatmul.mubr.msk.f32.gmra.mrb[4].mxu0 %vm411_vm0, %v843_v28  ;;  %929 = vmatmul.mubr.msk.f32.gmra.mrb[4].mxu1 %vm411_vm0, %v851_v27 }
  0xb4   : > { %v352_v29 = vpop.permute.xlu1 %351  ;;  %v328_v30 = vpop.permute.xlu0 %327 }
  0xb5   : > { %vm370_vm13 = vcmp.eq.s32.totalorder %v352_v29, %v1061_v3  ;;  %vm362_vm14 = vcmp.eq.s32.totalorder %v328_v30, %v1061_v3 }
  0xb6   : > { %v852_v31 = vsel %vm370_vm13, 1.0, %v978_v6  ;;  %v844_v32 = vsel %vm362_vm14, 1.0, %v978_v6 }
  0xb7   : > { %919 = vmatprep.mubr.msk.f32.mxu0 %vm411_vm0, %v844_v32  ;;  %931 = vmatprep.mubr.msk.f32.mxu1 %vm411_vm0, %v852_v31  ;;  %v654_v31 = vcombine.high %v644_v63, %v644_v63  ;;  %v655_v32 = vcombine.high %v651_v0, %v651_v0 }
  0xb8   : > { %v355_v33 = vpop.permute.xlu1 %354  ;;  %v331_v34 = vpop.permute.xlu0 %330 }
  0xb9   : > { %vm371_vm15 = vcmp.eq.s32.totalorder %v355_v33, %v1061_v3  ;;  %vm363_vm1 = vcmp.eq.s32.totalorder %v331_v34, %v1061_v3  ;;  %v663_v3 = vrot.slane %v644_v63, %v1097_v46 }
  0xba   : > { %v853_v35 = vsel %vm371_vm15, 1.0, %v978_v6  ;;  %v845_v36 = vsel %vm363_vm1, 1.0, %v978_v6 }
  0xbb   : > { %920 = vmatmul.mubr.msk.f32.gmra.mrb[6].mxu0 %vm411_vm0, %v845_v36  ;;  %932 = vmatmul.mubr.msk.f32.gmra.mrb[6].mxu1 %vm411_vm0, %v853_v35  ;;  %vm728_vm0 = vcmask 261120   ;;  %v671_v35 = vrot.slane %v654_v31, %v1097_v46  ;;  %v687_v36 = vrot.slane %v655_v32, %v1097_v46 }
 0x173   : > { %v912_v50 = vpop.f32.mrb[0].mxu0 }
 0x174   : > { %v697_v51 = vmul.f32 5.656854, %v912_v50  ;;  %v526_v52 = vpop.f32.mrb[1].mxu0 }
 0x175   : > { %v696_v53 = vmul.f32 5.656854, %v526_v52 }
 0x176   : > { %v713_v56 = vadd.f32 %v697_v51, %v659_v48 }
 0x177   : > { %v712_v58 = vadd.f32 %v696_v53, %v659_v48  ;;  %v924_v59 = vpop.f32.mrb[0].mxu1 }
 0x178   : > { %730 = vst.msk [vmem:[%s1021_s26 + $0x8] sm:$0xff] %vm728_vm0, %v713_v56  ;;  %v705_v60 = vmul.f32 5.656854, %v924_v59  ;;  %v566_v61 = vpop.f32.mrb[1].mxu1 }
 0x179   : > { %729 = vst.msk [vmem:[%s1021_s26] sm:$0xff] %vm728_vm0, %v712_v58  ;;  %v704_v62 = vmul.f32 5.656854, %v566_v61 }
 0x17a   : > { %v721_v1 = vadd.f32 %v705_v60, %v675_v57 }
 0x17b   : > { %v720_v2 = vadd.f32 %v704_v62, %v675_v57 }
 0x17c   : > { %738 = vst.msk [vmem:[%s1021_s26 + $0x48] sm:$0xff] %vm728_vm0, %v721_v1 }
 0x17d   : > { %737 = vst.msk [vmem:[%s1021_s26 + $0x40] sm:$0xff] %vm728_vm0, %v720_v2 }
 0x17e   : > { %v915_v5 = vpop.f32.mrb[2].mxu0  ;;  %v927_v6 = vpop.f32.mrb[2].mxu1 }
 0x17f   : > { %v699_v7 = vmul.f32 5.656854, %v915_v5  ;;  %v707_v8 = vmul.f32 5.656854, %v927_v6  ;;  %v536_v9 = vpop.f32.mrb[3].mxu0  ;;  %v576_v10 = vpop.f32.mrb[3].mxu1 }
 0x180   : > { %v698_v11 = vmul.f32 5.656854, %v536_v9  ;;  %v706_v12 = vmul.f32 5.656854, %v576_v10 }
 0x181   : > { %v715_v13 = vadd.f32 %v699_v7, %v663_v3  ;;  %v723_v14 = vadd.f32 %v707_v8, %v679_v4 }
 0x182   : > { %v714_v17 = vadd.f32 %v698_v11, %v663_v3  ;;  %v722_v18 = vadd.f32 %v706_v12, %v679_v4 }
 0x183   : > { %732 = vst.msk [vmem:[%s1021_s26 + $0x18] sm:$0xff] %vm728_vm0, %v715_v13  ;;  %740 = vst.msk [vmem:[%s1021_s26 + $0x58] sm:$0xff] %vm728_vm0, %v723_v14 }
 0x184   : > { %731 = vst.msk [vmem:[%s1021_s26 + $0x10] sm:$0xff] %vm728_vm0, %v714_v17  ;;  %739 = vst.msk [vmem:[%s1021_s26 + $0x50] sm:$0xff] %vm728_vm0, %v722_v18 }
 0x186   : > { %v918_v21 = vpop.f32.mrb[4].mxu0  ;;  %v930_v22 = vpop.f32.mrb[4].mxu1 }
 0x187   : > { %v701_v23 = vmul.f32 5.656854, %v918_v21  ;;  %v709_v24 = vmul.f32 5.656854, %v930_v22  ;;  %v546_v25 = vpop.f32.mrb[5].mxu0  ;;  %v586_v26 = vpop.f32.mrb[5].mxu1 }
 0x188   : > { %v700_v27 = vmul.f32 5.656854, %v546_v25  ;;  %v708_v28 = vmul.f32 5.656854, %v586_v26 }
 0x189   : > { %v717_v29 = vadd.f32 %v701_v23, %v667_v19  ;;  %v725_v30 = vadd.f32 %v709_v24, %v683_v20 }
 0x18a   : > { %v716_v33 = vadd.f32 %v700_v27, %v667_v19  ;;  %v724_v34 = vadd.f32 %v708_v28, %v683_v20 }
 0x18b   : > { %734 = vst.msk [vmem:[%s1021_s26 + $0x28] sm:$0xff] %vm728_vm0, %v717_v29  ;;  %742 = vst.msk [vmem:[%s1021_s26 + $0x68] sm:$0xff] %vm728_vm0, %v725_v30 }
 0x18c   : > { %733 = vst.msk [vmem:[%s1021_s26 + $0x20] sm:$0xff] %vm728_vm0, %v716_v33  ;;  %741 = vst.msk [vmem:[%s1021_s26 + $0x60] sm:$0xff] %vm728_vm0, %v724_v34 }
 0x18e   : > { %v921_v37 = vpop.f32.mrb[6].mxu0  ;;  %v933_v38 = vpop.f32.mrb[6].mxu1 }
 0x18f   : > { %v703_v39 = vmul.f32 5.656854, %v921_v37  ;;  %v711_v40 = vmul.f32 5.656854, %v933_v38  ;;  %v556_v41 = vpop.f32.mrb[7].mxu0  ;;  %v596_v42 = vpop.f32.mrb[7].mxu1 }
 0x190   : > { %v702_v43 = vmul.f32 5.656854, %v556_v41  ;;  %v710_v44 = vmul.f32 5.656854, %v596_v42 }
 0x191   : > { %v719_v45 = vadd.f32 %v703_v39, %v671_v35  ;;  %v727_v47 = vadd.f32 %v711_v40, %v687_v36 }
 0x192   : > { %v718_v48 = vadd.f32 %v702_v43, %v671_v35  ;;  %v726_v49 = vadd.f32 %v710_v44, %v687_v36 }
 0x193   : > { %736 = vst.msk [vmem:[%s1021_s26 + $0x38] sm:$0xff] %vm728_vm0, %v719_v45  ;;  %744 = vst.msk [vmem:[%s1021_s26 + $0x78] sm:$0xff] %vm728_vm0, %v727_v47 }
 0x194   : > { %735 = vst.msk [vmem:[%s1021_s26 + $0x30] sm:$0xff] %vm728_vm0, %v718_v48  ;;  %743 = vst.msk [vmem:[%s1021_s26 + $0x70] sm:$0xff] %vm728_vm0, %v726_v49 }
 0x195 PF: > { %s13_s12 = sadd.s32 1, %s975_s12  }
 0x196   : > { %p10_p6 = scmp.ge.s32.totalorder %s13_s12, 4  }
 0x198   :  { %12 = sbr.rel (!%p10_p6) target bundleno = 1 (0x1), region = 107 }
 0x19f   :  { %767 = vsyncmov [#allocation3] }
 0x1a2   :  { %s768_s15 = vpop.sfrf %767 }
 0x1a3   :  { %p872_p7 = scmp.ne.s32.totalorder %s768_s15, 0 }
 0x1a5   :  { %772 = shalt.err (%p872_p7)  }

</bundles_post_ra>
